<compile_context>
chip_gen: v5e
topology: v5e:2x2
jax: 0.10.0
libtpu: 0.0.40
codegen_flags: <defaults>
</compile_context>

<pallas_src>
import functools

import jax
import jax.numpy as jnp
from jax.experimental import pallas as pl
from jax.experimental.pallas import tpu as pltpu


def _cdiv(a, b):
    return (a + b - 1) // b


def _round_up(a, b):
    return _cdiv(a, b) * b


def _concrete_float(v):
    """Return float(v[0]) if v is concrete, else None (e.g. under jit)."""
    try:
        return float(jnp.asarray(v).reshape(-1)[0])
    except Exception:
        return None


def _pick_vmem_limit_bytes():
    """Generation-aware scoped-VMEM limit: ~3/4 of physical, capped at 64 MiB."""
    try:
        cap = int(pltpu.get_tpu_info().vmem_capacity_bytes)
    except Exception:
        return 32 << 20  # conservative default (works on every generation)
    return int(min(64 << 20, (cap * 3) // 4))  # ~48 MiB on v7x, 64 MiB on v5e/v6e


def _gem_pow_mean_kernel(p_ref, x_ref, o_ref, *, eps, g, cols, p_static, compute_dtype):
    # p_ref: SMEM (1,) f32 (only used by the dynamic-p path)
    # x_ref: VMEM (TR, g*cols) input tile;  o_ref: VMEM (TR, g) f32 per-row mean(x^p)
    x = x_ref[...]
    if x.dtype != compute_dtype:
        x = x.astype(compute_dtype)
    tr = x.shape[0]

    if g > 1:
        x = x.reshape(tr, g, cols)           # pack g channels per kernel row
    xc = jnp.maximum(x, eps)                 # clamp(min=eps), matches torch

    if p_static is not None:
        # Static integer exponent: repeated VPU multiplies (no EUP exp/log).
        xp = xc
        for _ in range(int(p_static) - 1):
            xp = xp * xc
    else:
        p = p_ref[0].astype(compute_dtype)   # dynamic learnable p (EUP exp/log)
        xp = jnp.power(xc, p)

    # Spatial mean, always accumulated in f32.
    if g > 1:
        m = jnp.mean(xp, axis=-1, dtype=jnp.float32)                 # (TR, g)
    else:
        m = jnp.mean(xp, axis=-1, keepdims=True, dtype=jnp.float32)  # (TR, 1)

    # The 1/p root is applied in the wrapper on a lane-dense flat vector.
    o_ref[...] = m


def gem_pallas(x, p, eps=1e-6, p_static="auto"):
    """GeM pooling. x: (N, C, H, W); p: (1,) f32 learnable param -> (N, C, 1, 1).

    p_static:
      "auto" (default): if p is concrete and integer-valued, use the VPU
                        multiply path; otherwise fall back to dynamic pow.
      None            : force the dynamic (EUP pow) path.
      int             : force the static path (must match runtime p).
    """
    N, C, H, W = x.shape
    rows, cols = N * C, H * W

    # --- Resolve the static-p fast path -------------------------------------
    p_val = _concrete_float(p)
    if p_static == "auto":
        p_static = None
        if p_val is not None and abs(p_val - round(p_val)) < 1e-12 and 1 <= round(p_val) <= 8:
            p_static = int(round(p_val))
    elif p_static is not None:
        p_static = int(p_static)
        if p_static < 1:
            raise ValueError("p_static must be a positive integer")
        if p_val is not None and abs(p_val - p_static) > 1e-6:
            raise ValueError(f"p_static={p_static} does not match runtime p={p_val}")

    # --- Channel packing for small spatial extents ---------------------------
    g, pad_rows = 1, 0
    if cols < 128:
        g0 = max(1, 128 // cols)
        for cand in range(g0, 1, -1):        # prefer a divisor of rows (no pad)
            if rows % cand == 0:
                g = cand
                break
        else:
            if g0 > 1:                        # keep packing; pad at most g0-1 rows
                g = g0
                pad_rows = _round_up(rows, g) - rows
    rows_p = rows + pad_rows
    R = rows_p // g
    CW = g * cols

    x2d = x.reshape(rows, cols)
    if pad_rows:
        x2d = jnp.pad(x2d, ((0, pad_rows), (0, 0)), constant_values=1.0)
    x2d = x2d.reshape(R, CW)

    compute_dtype = x.dtype if x.dtype in (jnp.float32, jnp.bfloat16) else jnp.float32

    # --- Row-tile sizing ------------------------------------------------------
    vmem_limit = _pick_vmem_limit_bytes()
    block_budget = max(2 << 20, min(16 << 20, vmem_limit // 6))  # per input buffer
    bytes_per_row = CW * x2d.dtype.itemsize
    TR = block_budget // max(1, bytes_per_row)
    TR = max(8, min(8192, (TR // 8) * 8))
    TR = min(TR, _round_up(R, 8))
    if R > 8:  # make sure megacore (v7x) gets >= 2 blocks when rows allow
        TR = min(TR, _round_up(_cdiv(R, 2), 8))
    TR = max(8, TR)
    nblk = _cdiv(R, TR)
    if nblk > 1 and nblk % 2 == 1:           # prefer an even block count
        TR_alt = max(8, _round_up(_cdiv(R, nblk + 1), 8))
        if _cdiv(R, TR_alt) % 2 == 0:
            TR = TR_alt
    grid = (_cdiv(R, TR),)                   # ragged last block; no row padding

    kernel = functools.partial(
        _gem_pow_mean_kernel,
        eps=eps, g=g, cols=cols, p_static=p_static, compute_dtype=compute_dtype,
    )

    n_el = R * CW
    mul_per_el = (p_static - 1) if p_static is not None else 0
    cost = pl.CostEstimate(
        flops=int(n_el * (2 + mul_per_el)),
        transcendentals=int(0 if p_static is not None else 2 * n_el),
        bytes_accessed=int(n_el * x2d.dtype.itemsize + R * g * 4),
    )

    p_arr = jnp.asarray(p, jnp.float32).reshape(1)

    out2d = pl.pallas_call(
        kernel,
        out_shape=jax.ShapeDtypeStruct((R, g), jnp.float32),
        grid=grid,
        in_specs=[
            pl.BlockSpec(memory_space=pltpu.SMEM),       # p (1,) scalar in SMEM
            pl.BlockSpec((TR, CW), lambda i: (i, 0)),    # row-tiled input
        ],
        out_specs=pl.BlockSpec((TR, g), lambda i: (i, 0)),
        compiler_params=pltpu.CompilerParams(
            dimension_semantics=("parallel",),           # megacore split on v7x
            vmem_limit_bytes=vmem_limit,
        ),
        cost_estimate=cost,
    )(p_arr, x2d)

    # Epilogue: drop pad rows, apply the 1/p root on a lane-dense flat vector.
    m_flat = out2d.reshape(-1)[:rows]                    # (N*C,) f32 means
    p_scalar = jnp.asarray(p, jnp.float32).reshape(-1)[0]
    out = jnp.power(m_flat, 1.0 / p_scalar).astype(x.dtype)
    return out.reshape(N, C, 1, 1)


def gem_reference(x, p, eps=1e-6):
    pv = jnp.asarray(p, jnp.float32).reshape(-1)[0]
    xc = jnp.maximum(x, eps)                             # == torch clamp(min=eps)
    m = jnp.mean(jnp.power(xc, pv), axis=(-2, -1), keepdims=True)
    return jnp.power(m, 1.0 / pv).astype(x.dtype)


if __name__ == "__main__":
    key = jax.random.PRNGKey(0)

    # Matches nn.Parameter(torch.ones(1) * p) with p=3.
    p_param = jnp.ones((1,), dtype=jnp.float32) * 3.0

    # Main shape (module's typical small-scale use).
    N, C, H, W = 2, 4, 16, 16
    x = jax.random.normal(key, (N, C, H, W), dtype=jnp.float32)
    ref = gem_reference(x, p_param, eps=1e-6)

    # Default path: p=3 is concrete & integral -> static VPU-multiply path.
    out = jax.block_until_ready(gem_pallas(x, p_param, eps=1e-6))
    assert out.shape == (N, C, 1, 1), out.shape
    assert jnp.allclose(out, ref, atol=1e-5, rtol=1e-5)

    # Forced dynamic (learnable-p / traced-p) path.
    out_dyn = jax.block_until_ready(gem_pallas(x, p_param, eps=1e-6, p_static=None))
    assert jnp.allclose(out_dyn, ref, atol=1e-5, rtol=1e-5)

    # Small spatial extent -> channel packing (H*W = 49 < 128, g = 2, no pad).
    x2 = jax.random.normal(jax.random.PRNGKey(1), (2, 8, 7, 7), dtype=jnp.float32)
    out2 = jax.block_until_ready(gem_pallas(x2, p_param, eps=1e-6))
    ref2 = gem_reference(x2, p_param, eps=1e-6)
    assert out2.shape == (2, 8, 1, 1), out2.shape
    assert jnp.allclose(out2, ref2, atol=1e-5, rtol=1e-5)

    # Packing kept even when rows % g != 0 (tiny row pad) + ragged block.
    x3 = jax.random.normal(jax.random.PRNGKey(2), (1, 5, 7, 7), dtype=jnp.float32)
    out3 = jax.block_until_ready(gem_pallas(x3, p_param, eps=1e-6))
    ref3 = gem_reference(x3, p_param, eps=1e-6)
    assert out3.shape == (1, 5, 1, 1), out3.shape
    assert jnp.allclose(out3, ref3, atol=1e-5, rtol=1e-5)

    # Multi-block grid with a ragged last block (rows not a tile multiple).
    x4 = jax.random.normal(jax.random.PRNGKey(3), (3, 7, 16, 16), dtype=jnp.float32)
    out4 = jax.block_until_ready(gem_pallas(x4, p_param, eps=1e-6))
    ref4 = gem_reference(x4, p_param, eps=1e-6)
    assert out4.shape == (3, 7, 1, 1), out4.shape
    assert jnp.allclose(out4, ref4, atol=1e-5, rtol=1e-5)

    print("KERNEL_OK")
</pallas_src>

<mosaic_0001>
module attributes {stable_mosaic.version = 11 : i64} {
  func.func @_gem_pow_mean_kernel(%arg0: i32, %arg1: memref<1xf32, #tpu.memory_space<smem>>, %arg2: memref<8x256xf32, #tpu.memory_space<vmem>>, %arg3: memref<8x1xf32, #tpu.memory_space<vmem>>) attributes {dimension_semantics = [#tpu.dimension_semantics<parallel>], iteration_bounds = array<i64: 1>, scalar_prefetch = 0 : i64, scratch_operands = 0 : i64, tpu.core_type = #tpu.core_type<tc>, window_params = [{transform_indices = @transform_0, window_bounds = array<i64: 1>}, {transform_indices = @transform_1, window_bounds = array<i64: 8, 256>}, {transform_indices = @transform_2, window_bounds = array<i64: 8, 1>}]} {
    %c0 = arith.constant 0 : index
    %c0_0 = arith.constant 0 : index
    %0 = vector.load %arg2[%c0, %c0_0] : memref<8x256xf32, #tpu.memory_space<vmem>>, vector<8x256xf32>
    %cst = arith.constant 9.99999997E-7 : f32
    %1 = vector.broadcast %cst : f32 to vector<8x256xf32>
    %2 = arith.maximumf %0, %1 : vector<8x256xf32>
    %3 = arith.mulf %2, %2 : vector<8x256xf32>
    %4 = arith.mulf %3, %2 : vector<8x256xf32>
    %cst_1 = arith.constant dense<0.000000e+00> : vector<8xf32>
    %5 = vector.multi_reduction <add>, %4, %cst_1 [1] : vector<8x256xf32> to vector<8xf32>
    %6 = vector.shape_cast %5 : vector<8xf32> to vector<8x1xf32>
    %cst_2 = arith.constant 2.560000e+02 : f32
    %7 = vector.broadcast %cst_2 : f32 to vector<8x1xf32>
    %8 = arith.divf %6, %7 : vector<8x1xf32>
    %c0_3 = arith.constant 0 : index
    %c0_4 = arith.constant 0 : index
    %9 = vector.load %arg3[%c0_3, %c0_4] : memref<8x1xf32, #tpu.memory_space<vmem>>, vector<8x1xf32>
    tpu.vector_store %arg3[%c0_3, %c0_4], %8 {strides = array<i32>} : memref<8x1xf32, #tpu.memory_space<vmem>>, vector<8x1xf32>,
    return
  }
  func.func @transform_0(%arg0: i32) -> i32 {
    %c0_i32 = arith.constant 0 : i32
    %c0_i32_0 = arith.constant 0 : i32
    return %c0_i32 : i32
  }
  func.func @transform_1(%arg0: i32) -> (i32, i32) {
    %c0_i32 = arith.constant 0 : i32
    %c0_i32_0 = arith.constant 0 : i32
    return %arg0, %c0_i32 : i32, i32
  }
  func.func @transform_2(%arg0: i32) -> (i32, i32) {
    %c0_i32 = arith.constant 0 : i32
    %c0_i32_0 = arith.constant 0 : i32
    return %arg0, %c0_i32 : i32, i32
  }
}

</mosaic_0001>

<bundles_post_ra>
// kernel: tpu_custom_call.1
= control target key start
LH: loop header
LB: loop body
LE: loop exit
PB: predicated region body
PF: predicated region fallthrough
CT: control target
= control target key end

     0   :  { %8 = vsyncpa [#allocation4], 0  ;;  %s82_s12 = smov [#allocation3]   ;;  %s105_s0 = inlined_call_operand.<no memory space> [shape: f32[1], index: 0, kind: input, shape index: {}]   ;;  %s106_s1 = inlined_call_operand.hbm [shape: f32[8,256], index: 1, kind: input, shape index: {}]   ;;  %s107_s2 = inlined_call_operand.vmem [shape: f32[8,1], index: 2, kind: output, shape index: {}]  }
   0x1   :  { %s16_s11 = sshll.u32 %s106_s1, 4  ;;  %s18_s13 = sshll.u32 %s82_s12, 4  ;;  %s17_s11 = int_to_ptr.hbm [resolvable:$true] %s16_s11  ;;  %s19_s13 = int_to_ptr.vmem [resolvable:$true] %s18_s13 }
   0x2   :  { %21 = dma.hbm_to_vmem [thread:$0]  %s17_s11, 256, %s19_s13, [#allocation4]  }
   0x3   :  { %80 = dma.done.wait [#allocation4], 256  }
   0x4   :  { %81 = vsyncadd [#allocation4], 4294967040  ;;  %v26_v0 = vld [vmem:[#allocation3] sm:$0xff]  ;;  %v27_v1 = vld [vmem:[#allocation3 + $0x8] sm:$0xff]  ;;  %v83_v9 = vmov 256.0   ;;  %vm45_vm1 = vcmask 7168  }
   0x5   :  { %v28_v2 = vmax.f32 %v26_v0, 1e-06  ;;  %v29_v3 = vmax.f32 %v27_v1, 1e-06  ;;  %54 = vrcp.f32 %v83_v9 }
   0x7   :  { %v30_v4 = vmul.f32 %v28_v2, %v28_v2  ;;  %v31_v5 = vmul.f32 %v29_v3, %v29_v3 }
   0x9   :  { %v32_v6 = vmul.f32 %v30_v4, %v28_v2  ;;  %v33_v7 = vmul.f32 %v31_v5, %v29_v3 }
   0xb   :  { %v34_v8 = vadd.f32 %v33_v7, %v32_v6  ;;  %v55_v10 = vpop.eup %54 }
   0xc   :  { %v38_v11 = vmul.f32 256.0, %v55_v10  ;;  %vm42_vm0 = vweird.f32 %v55_v10 }
   0xd   :  { %35 = vadd.xlane.f32.xlu0 %v34_v8 }
   0xe   :  { %v39_v12 = vsub.f32 1.0, %v38_v11 }
  0x10   :  { %v40_v13 = vmul.f32 %v55_v10, %v39_v12 }
  0x12   :  { %v41_v14 = vadd.f32 %v55_v10, %v40_v13 }
  0x14   :  { %v43_v15 = vsel %vm42_vm0, %v55_v10, %v41_v14 }
  0x80   :  { %v36_v16 = vpop.xlane.xlu0 %35 }
  0x81   :  { %v44_v17 = vmul.f32 %v43_v15, %v36_v16 }
  0x83   :  { %46 = vst.msk [vmem:[%s107_s2] sm:$0xff] %vm45_vm1, %v44_v17 }
  0x84   :  { %51 = vsyncpa [#allocation4], 1 }

</bundles_post_ra>
